<compile_context>
chip_gen: v7x
topology: tpu7x:2x2x1
jax: 0.10.0
libtpu: 0.0.40
codegen_flags: <defaults>
</compile_context>

<pallas_src>
import functools

import jax
import jax.numpy as jnp
from jax import lax
from jax.experimental import pallas as pl
from jax.experimental.pallas import tpu as pltpu


def _round_up(x, m):
    return (x + m - 1) // m * m


def _cdiv(a, b):
    return (a + b - 1) // b


def _pick_tile_b(B, max_tile=1024, align=128):
    """Pick the batch tile size.

    * If the whole batch fits in a single <=128-row block, TILE_B == B (block
      dim equal to the full array dim, so any B is legal).
    * Otherwise: a multiple of 128 (sublane/lane friendly on v5e/v6e/v7x),
      balanced so there are >= 2 blocks (v7x megacore split of the "parallel"
      batch axis) and the last block is not mostly padding, capped at
      `max_tile` (1024 keeps double-buffered x tiles + intermediates + weights
      comfortably inside a 32 MiB scoped-VMEM budget on every generation).
    """
    if B <= align:
        return B
    g = max(_cdiv(B, max_tile), 2)
    return min(_round_up(_cdiv(B, g), align), max_tile)


def _vae_encoder_kld_kernel(x_ref, w1_ref, b1_ref, w2_ref, b2_ref, w3_ref, b3_ref,
                            kld_ref, *, tile_b, actual_b):
    i = pl.program_id(0)

    # bf16 inputs to the MXU, f32 accumulation (no-op cast if x is already bf16).
    x = x_ref[...].astype(w1_ref.dtype)                          # (TILE_B, 784)

    # encoder: 784 -> 256 -> 64 -> 20, ReLU after every Linear (matches the
    # nn.Sequential spec, including the ReLU on the mu|sigma head).
    h1 = jnp.maximum(
        jnp.dot(x, w1_ref[...], preferred_element_type=jnp.float32)
        + b1_ref[...], 0.0)
    h2 = jnp.maximum(
        jnp.dot(h1.astype(w2_ref.dtype), w2_ref[...],
                preferred_element_type=jnp.float32) + b2_ref[...], 0.0)
    h3 = jnp.maximum(
        jnp.dot(h2.astype(w3_ref.dtype), w3_ref[...],
                preferred_element_type=jnp.float32) + b3_ref[...], 0.0)  # (TILE_B, 20)

    # KLD term on the packed (mu | sigma) head:
    #   lanes  0..9  (mu)   :  mu^2
    #   lanes 10..19 (sigma):  sigma^2 - log(1e-8 + sigma^2) - 1
    sq = h3 * h3
    lane = lax.broadcasted_iota(jnp.int32, sq.shape, 1)
    term = sq - jnp.where(lane >= 10, jnp.log(1e-8 + sq) + 1.0, 0.0)

    # Mask rows of the (undefined-data) partial last block.  jnp.where is a
    # select, so garbage values cannot poison the reduction.  Static decision.
    if actual_b % tile_b != 0:
        row = i * tile_b + lax.broadcasted_iota(jnp.int32, sq.shape, 0)
        term = jnp.where(row < actual_b, term, 0.0)

    partial = jnp.sum(term, axis=(0, 1), keepdims=True)          # (1, 1) f32
    # Lane-dense per-block partial tile; no cross-step state -> batch axis is
    # "parallel" (v7x splits blocks across its two TensorCores).
    kld_ref[...] = jnp.broadcast_to(partial, kld_ref.shape)


def vae_forward(x, params, *, tile_b=1024):
    """Forward pass matching the PyTorch VAE.forward().

    Returns (x_flat, kld):
      x_flat : (B, 784), the flattened input (what the module returns as x)
      kld    : scalar  0.5 * sum(mu^2 + sigma^2 - log(1e-8 + sigma^2) - 1) / (B*28*28)
    """
    w1, b1, w2, b2, w3, b3 = params
    B = x.shape[0]
    x_flat = x.reshape(B, 784)
    if x_flat.dtype not in (jnp.float32, jnp.bfloat16):
        x_flat = x_flat.astype(jnp.float32)

    TILE_B = _pick_tile_b(B, max_tile=tile_b)
    G = _cdiv(B, TILE_B)            # no jnp.pad: partial last block + row mask

    kernel = functools.partial(_vae_encoder_kld_kernel, tile_b=TILE_B, actual_b=B)

    def const_spec(shape):
        return pl.BlockSpec(shape, lambda i: (0, 0))

    partials = pl.pallas_call(
        kernel,
        out_shape=jax.ShapeDtypeStruct((G * 8, 128), jnp.float32),
        grid=(G,),
        in_specs=[
            pl.BlockSpec((TILE_B, 784), lambda i: (i, 0)),       # batch tile of x
            const_spec(w1.shape), const_spec(b1.shape),          # weights stay
            const_spec(w2.shape), const_spec(b2.shape),          # resident in VMEM
            const_spec(w3.shape), const_spec(b3.shape),
        ],
        out_specs=pl.BlockSpec((8, 128), lambda i: (i, 0)),
        compiler_params=pltpu.CompilerParams(
            dimension_semantics=("parallel",),
            vmem_limit_bytes=32 * 1024 * 1024),
    )(x_flat, w1, b1, w2, b2, w3, b3)

    kld_sum = jnp.sum(partials.reshape(G, 8, 128)[:, 0, 0])
    kld = 0.5 * kld_sum / (B * 28 * 28)
    return x_flat, kld


def init_linear(key, fan_in, fan_out, w_dtype=jnp.bfloat16):
    """nn.Linear init: U(-1/sqrt(fan_in), +1/sqrt(fan_in)); weight stored (in, out)."""
    k = 1.0 / (fan_in ** 0.5)
    kw, kb = jax.random.split(key)
    w = jax.random.uniform(kw, (fan_in, fan_out), jnp.float32, minval=-k, maxval=k)
    b = jax.random.uniform(kb, (1, fan_out), jnp.float32, minval=-k, maxval=k)
    return w.astype(w_dtype), b


if __name__ == "__main__":
    key = jax.random.PRNGKey(0)
    keys = jax.random.split(key, 5)

    # Encoder: 784 -> 256 -> 64 -> 20 (fused mu|sigma head, chunked by lanes).
    # Decoder params do not affect forward()'s returned (x, kld).
    w1, b1 = init_linear(keys[0], 784, 256)
    w2, b2 = init_linear(keys[1], 256, 64)
    w3, b3 = init_linear(keys[2], 64, 20)
    params = (w1, b1, w2, b2, w3, b3)

    # Small demo batch matching the module's (B, 1, 28, 28) input.
    B = 2
    x = jax.random.normal(keys[3], (B, 1, 28, 28), dtype=jnp.float32)
    x_out, kld = vae_forward(x, params)
    jax.block_until_ready((x_out, kld))
    assert x_out.shape == (B, 784)
    assert kld.shape == ()
    assert bool(jnp.isfinite(kld))

    # Ragged batch exercises the (un-padded) partial-last-block + row-mask path;
    # validated against a pure-JAX f32 reference (bf16 MXU inputs -> loose tol).
    B2 = 200
    x2 = jax.random.normal(keys[4], (B2, 1, 28, 28), dtype=jnp.float32)
    x2_out, kld2 = vae_forward(x2, params)

    def ref_kld(xr):
        h = xr.reshape(xr.shape[0], 784)
        h = jnp.maximum(h @ w1.astype(jnp.float32) + b1, 0.0)
        h = jnp.maximum(h @ w2.astype(jnp.float32) + b2, 0.0)
        h = jnp.maximum(h @ w3.astype(jnp.float32) + b3, 0.0)
        mu, sigma = h[:, :10], h[:, 10:]
        return 0.5 * jnp.sum(mu ** 2 + sigma ** 2
                             - jnp.log(1e-8 + sigma ** 2) - 1.0) / (xr.shape[0] * 28 * 28)

    ref = ref_kld(x2)
    jax.block_until_ready((x2_out, kld2, ref))
    assert x2_out.shape == (B2, 784)
    assert bool(jnp.isfinite(kld2))
    assert abs(float(kld2) - float(ref)) <= 0.05 * abs(float(ref)) + 1e-3

    print("KERNEL_OK")
</pallas_src>

<mosaic_0001>
module attributes {stable_mosaic.version = 11 : i64} {
  func.func @_vae_encoder_kld_kernel(%arg0: i32, %arg1: memref<2x784xf32, #tpu.memory_space<vmem>>, %arg2: memref<784x256xbf16, #tpu.memory_space<vmem>>, %arg3: memref<1x256xf32, #tpu.memory_space<vmem>>, %arg4: memref<256x64xbf16, #tpu.memory_space<vmem>>, %arg5: memref<1x64xf32, #tpu.memory_space<vmem>>, %arg6: memref<64x20xbf16, #tpu.memory_space<vmem>>, %arg7: memref<1x20xf32, #tpu.memory_space<vmem>>, %arg8: memref<8x128xf32, #tpu.memory_space<vmem>>) attributes {dimension_semantics = [#tpu.dimension_semantics<parallel>], iteration_bounds = array<i64: 1>, scalar_prefetch = 0 : i64, scratch_operands = 0 : i64, tpu.core_type = #tpu.core_type<tc>, window_params = [{transform_indices = @transform_0, window_bounds = array<i64: 2, 784>}, {pipeline_mode = #tpu.pipeline_mode<synchronous>, transform_indices = @transform_1, window_bounds = array<i64: 784, 256>}, {pipeline_mode = #tpu.pipeline_mode<synchronous>, transform_indices = @transform_2, window_bounds = array<i64: 1, 256>}, {pipeline_mode = #tpu.pipeline_mode<synchronous>, transform_indices = @transform_3, window_bounds = array<i64: 256, 64>}, {pipeline_mode = #tpu.pipeline_mode<synchronous>, transform_indices = @transform_4, window_bounds = array<i64: 1, 64>}, {pipeline_mode = #tpu.pipeline_mode<synchronous>, transform_indices = @transform_5, window_bounds = array<i64: 64, 20>}, {pipeline_mode = #tpu.pipeline_mode<synchronous>, transform_indices = @transform_6, window_bounds = array<i64: 1, 20>}, {transform_indices = @transform_7, window_bounds = array<i64: 8, 128>}]} {
    %c0 = arith.constant 0 : index
    %c0_0 = arith.constant 0 : index
    %0 = vector.load %arg1[%c0, %c0_0] : memref<2x784xf32, #tpu.memory_space<vmem>>, vector<2x784xf32>
    %1 = arith.truncf %0 : vector<2x784xf32> to vector<2x784xbf16>
    %c0_1 = arith.constant 0 : index
    %c0_2 = arith.constant 0 : index
    %2 = vector.load %arg2[%c0_1, %c0_2] : memref<784x256xbf16, #tpu.memory_space<vmem>>, vector<784x256xbf16>
    %cst = arith.constant dense<0.000000e+00> : vector<2x256xf32>
    %3 = tpu.matmul %1, %2, %cst {dimension_numbers = #tpu.dot_dimension_numbers<[1], [0], [0], [1], [0, 0, 1, 1], [], []>} : vector<2x784xbf16>, vector<784x256xbf16>, vector<2x256xf32> -> vector<2x256xf32>
    %c0_3 = arith.constant 0 : index
    %c0_4 = arith.constant 0 : index
    %4 = vector.load %arg3[%c0_3, %c0_4] : memref<1x256xf32, #tpu.memory_space<vmem>>, vector<1x256xf32>
    %5 = vector.broadcast %4 : vector<1x256xf32> to vector<2x256xf32>
    %6 = arith.addf %3, %5 : vector<2x256xf32>
    %cst_5 = arith.constant 0.000000e+00 : f32
    %7 = vector.broadcast %cst_5 : f32 to vector<2x256xf32>
    %8 = arith.maximumf %6, %7 : vector<2x256xf32>
    %9 = arith.truncf %8 : vector<2x256xf32> to vector<2x256xbf16>
    %c0_6 = arith.constant 0 : index
    %c0_7 = arith.constant 0 : index
    %10 = vector.load %arg4[%c0_6, %c0_7] : memref<256x64xbf16, #tpu.memory_space<vmem>>, vector<256x64xbf16>
    %cst_8 = arith.constant dense<0.000000e+00> : vector<2x64xf32>
    %11 = tpu.matmul %9, %10, %cst_8 {dimension_numbers = #tpu.dot_dimension_numbers<[1], [0], [0], [1], [0, 0, 1, 1], [], []>} : vector<2x256xbf16>, vector<256x64xbf16>, vector<2x64xf32> -> vector<2x64xf32>
    %c0_9 = arith.constant 0 : index
    %c0_10 = arith.constant 0 : index
    %12 = vector.load %arg5[%c0_9, %c0_10] : memref<1x64xf32, #tpu.memory_space<vmem>>, vector<1x64xf32>
    %13 = vector.broadcast %12 : vector<1x64xf32> to vector<2x64xf32>
    %14 = arith.addf %11, %13 : vector<2x64xf32>
    %cst_11 = arith.constant 0.000000e+00 : f32
    %15 = vector.broadcast %cst_11 : f32 to vector<2x64xf32>
    %16 = arith.maximumf %14, %15 : vector<2x64xf32>
    %17 = arith.truncf %16 : vector<2x64xf32> to vector<2x64xbf16>
    %c0_12 = arith.constant 0 : index
    %c0_13 = arith.constant 0 : index
    %18 = vector.load %arg6[%c0_12, %c0_13] : memref<64x20xbf16, #tpu.memory_space<vmem>>, vector<64x20xbf16>
    %cst_14 = arith.constant dense<0.000000e+00> : vector<2x20xf32>
    %19 = tpu.matmul %17, %18, %cst_14 {dimension_numbers = #tpu.dot_dimension_numbers<[1], [0], [0], [1], [0, 0, 1, 1], [], []>} : vector<2x64xbf16>, vector<64x20xbf16>, vector<2x20xf32> -> vector<2x20xf32>
    %c0_15 = arith.constant 0 : index
    %c0_16 = arith.constant 0 : index
    %20 = vector.load %arg7[%c0_15, %c0_16] : memref<1x20xf32, #tpu.memory_space<vmem>>, vector<1x20xf32>
    %21 = vector.broadcast %20 : vector<1x20xf32> to vector<2x20xf32>
    %22 = arith.addf %19, %21 : vector<2x20xf32>
    %cst_17 = arith.constant 0.000000e+00 : f32
    %23 = vector.broadcast %cst_17 : f32 to vector<2x20xf32>
    %24 = arith.maximumf %22, %23 : vector<2x20xf32>
    %25 = arith.mulf %24, %24 : vector<2x20xf32>
    %26 = tpu.iota {dimensions = array<i32: 1>} : vector<2x20xi32>
    %c10_i32 = arith.constant 10 : i32
    %27 = vector.broadcast %c10_i32 : i32 to vector<2x20xi32>
    %28 = arith.cmpi sge, %26, %27 : vector<2x20xi32>
    %cst_18 = arith.constant 9.99999993E-9 : f32
    %29 = vector.broadcast %cst_18 : f32 to vector<2x20xf32>
    %30 = arith.addf %29, %25 : vector<2x20xf32>
    %31 = math.log %30 : vector<2x20xf32>
    %cst_19 = arith.constant 1.000000e+00 : f32
    %32 = vector.broadcast %cst_19 : f32 to vector<2x20xf32>
    %33 = arith.addf %31, %32 : vector<2x20xf32>
    %cst_20 = arith.constant 0.000000e+00 : f32
    %34 = vector.broadcast %cst_20 : f32 to vector<2x20xf32>
    %35 = arith.select %28, %33, %34 : vector<2x20xi1>, vector<2x20xf32>
    %36 = arith.subf %25, %35 : vector<2x20xf32>
    %37 = vector.shape_cast %36 : vector<2x20xf32> to vector<1x2x20xf32>
    %cst_21 = arith.constant dense<0.000000e+00> : vector<1xf32>
    %38 = vector.multi_reduction <add>, %37, %cst_21 [1, 2] : vector<1x2x20xf32> to vector<1xf32>
    %39 = vector.shape_cast %38 : vector<1xf32> to vector<1x1x1xf32>
    %40 = vector.extract %39[0, 0, 0] : f32 from vector<1x1x1xf32>
    %41 = vector.broadcast %40 : f32 to vector<1x1xf32>
    %42 = vector.shape_cast %41 : vector<1x1xf32> to vector<1x1xf32>
    %43 = vector.broadcast %42 : vector<1x1xf32> to vector<8x128xf32>
    %c0_22 = arith.constant 0 : index
    %c0_23 = arith.constant 0 : index
    %44 = vector.load %arg8[%c0_22, %c0_23] : memref<8x128xf32, #tpu.memory_space<vmem>>, vector<8x128xf32>
    tpu.vector_store %arg8[%c0_22, %c0_23], %43 {strides = array<i32>} : memref<8x128xf32, #tpu.memory_space<vmem>>, vector<8x128xf32>,
    return
  }
  func.func @transform_0(%arg0: i32) -> (i32, i32) {
    %c0_i32 = arith.constant 0 : i32
    %c0_i32_0 = arith.constant 0 : i32
    return %arg0, %c0_i32 : i32, i32
  }
  func.func @transform_1(%arg0: i32) -> (i32, i32) {
    %c0_i32 = arith.constant 0 : i32
    %c0_i32_0 = arith.constant 0 : i32
    %c0_i32_1 = arith.constant 0 : i32
    return %c0_i32, %c0_i32_0 : i32, i32
  }
  func.func @transform_2(%arg0: i32) -> (i32, i32) {
    %c0_i32 = arith.constant 0 : i32
    %c0_i32_0 = arith.constant 0 : i32
    %c0_i32_1 = arith.constant 0 : i32
    return %c0_i32, %c0_i32_0 : i32, i32
  }
  func.func @transform_3(%arg0: i32) -> (i32, i32) {
    %c0_i32 = arith.constant 0 : i32
    %c0_i32_0 = arith.constant 0 : i32
    %c0_i32_1 = arith.constant 0 : i32
    return %c0_i32, %c0_i32_0 : i32, i32
  }
  func.func @transform_4(%arg0: i32) -> (i32, i32) {
    %c0_i32 = arith.constant 0 : i32
    %c0_i32_0 = arith.constant 0 : i32
    %c0_i32_1 = arith.constant 0 : i32
    return %c0_i32, %c0_i32_0 : i32, i32
  }
  func.func @transform_5(%arg0: i32) -> (i32, i32) {
    %c0_i32 = arith.constant 0 : i32
    %c0_i32_0 = arith.constant 0 : i32
    %c0_i32_1 = arith.constant 0 : i32
    return %c0_i32, %c0_i32_0 : i32, i32
  }
  func.func @transform_6(%arg0: i32) -> (i32, i32) {
    %c0_i32 = arith.constant 0 : i32
    %c0_i32_0 = arith.constant 0 : i32
    %c0_i32_1 = arith.constant 0 : i32
    return %c0_i32, %c0_i32_0 : i32, i32
  }
  func.func @transform_7(%arg0: i32) -> (i32, i32) {
    %c0_i32 = arith.constant 0 : i32
    %c0_i32_0 = arith.constant 0 : i32
    return %arg0, %c0_i32 : i32, i32
  }
}

</mosaic_0001>

<bundles_post_ra>
// kernel: tpu_custom_call.1
= control target key start
LH: loop header
LB: loop body
LE: loop exit
PB: predicated region body
PF: predicated region fallthrough
CT: control target
= control target key end

     0   :  { %12 = vsyncpa [#allocation3], 0  ;;  %s1742_s0 = inlined_call_operand.vmem [shape: f32[2,784], index: 0, kind: input, shape index: {}]   ;;  %s1743_s1 = inlined_call_operand.hbm [shape: bf16[784,256], index: 1, kind: input, shape index: {}]   ;;  %s1744_s2 = inlined_call_operand.vmem [shape: f32[1,256], index: 2, kind: input, shape index: {}]   ;;  %s1745_s3 = inlined_call_operand.vmem [shape: bf16[256,64], index: 3, kind: input, shape index: {}]   ;;  %s1746_s4 = inlined_call_operand.vmem [shape: f32[1,64], index: 4, kind: input, shape index: {}]   ;;  %s1747_s5 = inlined_call_operand.vmem [shape: bf16[64,20], index: 5, kind: input, shape index: {}]   ;;  %s1748_s6 = inlined_call_operand.vmem [shape: f32[1,20], index: 6, kind: input, shape index: {}]   ;;  %s1749_s7 = inlined_call_operand.hbm [shape: f32[8,128], index: 7, kind: output, shape index: {}]  }
   0x1   :  { %13 = vsyncpa [#allocation4], 0  ;;  %s1564_s24 = smov [#allocation2]   ;;  %s1516_s28 = scalar_lea.hbm %s1743_s1, 12544 }
   0x2   :  { %s21_s25 = sshll.u32 %s1564_s24, 4  ;;  %p1517_p0 = scmp.ne.s32.totalorder %s1743_s1, %s1516_s28  ;;  %s22_s25 = int_to_ptr.vmem [resolvable:$true] %s21_s25 }
   0x3   :  { %p1520_p1 = scmp.lt.u32.totalorder %s1516_s28, %s1743_s1 }
   0x5   :  { %p1522_p2 = pnand %p1520_p1, %p1517_p0 }
   0x7   :  { %1525 = shalt.err (!%p1522_p2)
}
   0x8   :  { %s1526_s10 = scalar_lea.vmem %s22_s25, 12544  ;;  %p1531_p4 = scmp.lt.s32.totalorder %s22_s25, %s22_s25 }
   0x9   :  { %p1527_p3 = scmp.ne.s32.totalorder %s22_s25, %s1526_s10  ;;  %p1532_p5 = scmp.lt.s32.totalorder %s1526_s10, %s1526_s10 }
   0xb   :  { %p1533_p6 = por %p1532_p5, %p1531_p4 }
   0xd   :  { %p1534_p7 = pnand %p1533_p6, %p1527_p3 }
   0xf   :  { %1537 = shalt.err (!%p1534_p7)
}
  0x10   :  { %s1565_s11 = smov 128   ;;  %s1566_s12 = smov 8  }
  0x11   :  { %27 = dma.hbm_to_vmem [thread:$0]  %s1743_s1, 12544, %s22_s25, [#allocation3], %s1565_s11, %s1565_s11, %s1566_s12  }
  0x12   :  { %1560 = dma.done.wait [#allocation3], 12544  }
  0x13   :  { %1561 = vsyncadd [#allocation3], 4294954752  ;;  %v1345_v0 = vld [vmem:[#allocation2 + $0x104] ss:$8 sps:$4 sm:$0xff]   ;;  %v1347_v1 = vld [vmem:[#allocation2 + $0x100] ss:$8 sps:$4 sm:$0xff]   ;;  %v50_v13 = vlaneseq }
  0x14   :  { %738 = vmatprep.subr.bf16.mxu0 %v1345_v0  ;;  %v1348_v2 = vld [vmem:[#allocation2 + $0x114] ss:$8 sps:$4 sm:$0xff]   ;;  %v1350_v3 = vld [vmem:[#allocation2 + $0x110] ss:$8 sps:$4 sm:$0xff]   ;;  %v1351_v4 = vld [vmem:[#allocation2 + $0x124] ss:$8 sps:$4 sm:$0xff]  }
  0x15   :  { %739 = vmatpush1.bf16.msra.mxu0 %v1347_v1  ;;  %v1353_v5 = vld [vmem:[#allocation2 + $0x120] ss:$8 sps:$4 sm:$0xff]   ;;  %v1354_v6 = vld [vmem:[#allocation2 + $0x134] ss:$8 sps:$4 sm:$0xff]   ;;  %v1356_v7 = vld [vmem:[#allocation2 + $0x130] ss:$8 sps:$4 sm:$0xff]  }
  0x16   :  { %740 = vmatprep.subr.bf16.mxu0 %v1348_v2  ;;  %v1357_v8 = vld [vmem:[#allocation2 + $0x144] ss:$8 sps:$4 sm:$0xff]   ;;  %v1359_v9 = vld [vmem:[#allocation2 + $0x140] ss:$8 sps:$4 sm:$0xff]   ;;  %v1360_v10 = vld [vmem:[#allocation2 + $0x154] ss:$8 sps:$4 sm:$0xff]  }
  0x17   :  { %v1567_v11 = vmov 1983009808   ;;  %v1362_v14 = vld [vmem:[#allocation2 + $0x150] ss:$8 sps:$4 sm:$0xff]   ;;  %v1387_v15 = vld [vmem:[#allocation2 + $0x4] ss:$8 sps:$4 sm:$0xff]  }
  0x18   :  { %v48_v12 = vunpack.c.l.s4 %v1567_v11  ;;  %v1389_v16 = vld [vmem:[#allocation2] ss:$8 sps:$4 sm:$0xff]   ;;  %v1363_v17 = vld [vmem:[#allocation2 + $0x164] ss:$8 sps:$4 sm:$0xff]   ;;  %v1625_v19 = vshrl.u32 %v50_v13, 7  ;;  %697 = vmatprep.subr.bf16.mxu1 %v1387_v15  ;;  %vm693_vm0 = vcmask 130048  }
  0x19   :  { %741 = vmatpush1.bf16.msra.mxu0 %v1350_v3  ;;  %698 = vmatpush1.bf16.msra.mxu1 %v1389_v16  ;;  %v1393_v20 = vld [vmem:[#allocation2 + $0x14] ss:$8 sps:$4 sm:$0xff]   ;;  %v1395_v21 = vld [vmem:[#allocation2 + $0x10] ss:$8 sps:$4 sm:$0xff]   ;;  %v1365_v22 = vld [vmem:[#allocation2 + $0x160] ss:$8 sps:$4 sm:$0xff]  }
  0x1a   :  { %742 = vmatprep.subr.bf16.mxu0 %v1351_v4  ;;  %v49_v18 = vunpack.c.0.s8 %v48_v12  ;;  %v1366_v23 = vld [vmem:[#allocation2 + $0x174] ss:$8 sps:$4 sm:$0xff]   ;;  %699 = vmatprep.subr.bf16.mxu1 %v1393_v20  ;;  %v1399_v24 = vld [vmem:[#allocation2 + $0x24] ss:$8 sps:$4 sm:$0xff]   ;;  %v1368_v27 = vld [vmem:[#allocation2 + $0x170] ss:$8 sps:$4 sm:$0xff]  }
  0x1b   :  { %v42_v26 = vld [vmem:[%s1742_s0] sm:$0xff]  ;;  %v1406_v31 = vld [vmem:[#allocation2 + $0x34] ss:$8 sps:$4 sm:$0xff]   ;;  %v1408_v37 = vld [vmem:[#allocation2 + $0x30] ss:$8 sps:$4 sm:$0xff]   ;;  %vm1570_vm1 = vmmov 0  }
  0x1c   :  { %v1628_v25 = vsub.s32 %v49_v18, %v1625_v19  ;;  %v1401_v28 = vld [vmem:[#allocation2 + $0x20] ss:$8 sps:$4 sm:$0xff]   ;;  %v46_v29 = vcombine.high %v42_v26, %v42_v26  ;;  %v1369_v32 = vld [vmem:[#allocation2 + $0x184] ss:$8 sps:$4 sm:$0xff]   ;;  %v1372_v40 = vld [vmem:[#allocation2 + $0x194] ss:$8 sps:$4 sm:$0xff]  }
  0x1d   :  { %743 = vmatpush1.bf16.msra.mxu0 %v1353_v5  ;;  %700 = vmatpush1.bf16.msra.mxu1 %v1395_v21  ;;  %v1371_v35 = vld [vmem:[#allocation2 + $0x180] ss:$8 sps:$4 sm:$0xff]   ;;  %v1412_v39 = vld [vmem:[#allocation2 + $0x44] ss:$8 sps:$4 sm:$0xff]   ;;  %v1374_v42 = vld [vmem:[#allocation2 + $0x190] ss:$8 sps:$4 sm:$0xff]  }
  0x1e   :  { %744 = vmatprep.subr.bf16.mxu0 %v1354_v6  ;;  %v1634_v30 = vrot.slane %v42_v26, %v1628_v25  ;;  %701 = vmatprep.subr.bf16.mxu1 %v1399_v24  ;;  %v1637_v33 = vrot.slane %v46_v29, %v1628_v25  ;;  %v1414_v43 = vld [vmem:[#allocation2 + $0x40] ss:$8 sps:$4 sm:$0xff]   ;;  %v1418_v44 = vld [vmem:[#allocation2 + $0x54] ss:$8 sps:$4 sm:$0xff]   ;;  %v1375_v45 = vld [vmem:[#allocation2 + $0x1a4] ss:$8 sps:$4 sm:$0xff]  }
  0x1f   :  { %v1377_v46 = vld [vmem:[#allocation2 + $0x1a0] ss:$8 sps:$4 sm:$0xff]   ;;  %v1420_v47 = vld [vmem:[#allocation2 + $0x50] ss:$8 sps:$4 sm:$0xff]   ;;  %v1424_v48 = vld [vmem:[#allocation2 + $0x64] ss:$8 sps:$4 sm:$0xff]  }
  0x20   :  { %v61_v34 = vcombine.high %v1634_v30, %v1634_v30  ;;  %v62_v36 = vcombine.high %v1637_v33, %v1637_v33  ;;  %v1378_v49 = vld [vmem:[#allocation2 + $0x1b4] ss:$8 sps:$4 sm:$0xff]   ;;  %v1380_v50 = vld [vmem:[#allocation2 + $0x1b0] ss:$8 sps:$4 sm:$0xff]   ;;  %v1426_v51 = vld [vmem:[#allocation2 + $0x60] ss:$8 sps:$4 sm:$0xff]  }
  0x21   :  { %745 = vmatpush1.bf16.msra.mxu0 %v1356_v7  ;;  %702 = vmatpush1.bf16.msra.mxu1 %v1401_v28  ;;  %v1430_v52 = vld [vmem:[#allocation2 + $0x74] ss:$8 sps:$4 sm:$0xff]   ;;  %v1381_v53 = vld [vmem:[#allocation2 + $0x1c4] ss:$8 sps:$4 sm:$0xff]   ;;  %v1383_v54 = vld [vmem:[#allocation2 + $0x1c0] ss:$8 sps:$4 sm:$0xff]   ;;  %v88_v7 = vpack.c.bf16 %v1637_v33, %v1637_v33 }
  0x22   :  { %746 = vmatprep.subr.bf16.mxu0 %v1357_v8  ;;  %v87_v38 = vpack.c.bf16 %v61_v34, %v61_v34  ;;  %703 = vmatprep.subr.bf16.mxu1 %v1406_v31  ;;  %v89_v41 = vpack.c.bf16 %v62_v36, %v62_v36  ;;  %v1432_v55 = vld [vmem:[#allocation2 + $0x70] ss:$8 sps:$4 sm:$0xff]   ;;  %v1436_v56 = vld [vmem:[#allocation2 + $0x84] ss:$8 sps:$4 sm:$0xff]   ;;  %v1384_v57 = vld [vmem:[#allocation2 + $0x1d4] ss:$8 sps:$4 sm:$0xff]  }
  0x23   :  { %v1386_v58 = vld [vmem:[#allocation2 + $0x1d0] ss:$8 sps:$4 sm:$0xff]   ;;  %v1438_v59 = vld [vmem:[#allocation2 + $0x80] ss:$8 sps:$4 sm:$0xff]   ;;  %v1442_v60 = vld [vmem:[#allocation2 + $0x94] ss:$8 sps:$4 sm:$0xff]  }
  0x24   :  { %729 = vmatprep.mubr.bf16.mxu1 %v87_v38  ;;  %770 = vmatprep.mubr.bf16.mxu0 %v89_v41  ;;  %v1390_v61 = vld [vmem:[#allocation2 + $0x1e4] ss:$8 sps:$4 sm:$0xff]   ;;  %v1392_v62 = vld [vmem:[#allocation2 + $0x1e0] ss:$8 sps:$4 sm:$0xff]   ;;  %v1444_v63 = vld [vmem:[#allocation2 + $0x90] ss:$8 sps:$4 sm:$0xff]  }
  0x25   :  { %747 = vmatpush1.bf16.msra.mxu0 %v1359_v9  ;;  %704 = vmatpush1.bf16.msra.mxu1 %v1408_v37  ;;  %v1448_v0 = vld [vmem:[#allocation2 + $0xa4] ss:$8 sps:$4 sm:$0xff]   ;;  %v1396_v1 = vld [vmem:[#allocation2 + $0x1f4] ss:$8 sps:$4 sm:$0xff]   ;;  %v1398_v2 = vld [vmem:[#allocation2 + $0x1f0] ss:$8 sps:$4 sm:$0xff]  }
  0x26   :  { %748 = vmatprep.subr.bf16.mxu0 %v1360_v10  ;;  %705 = vmatprep.subr.bf16.mxu1 %v1412_v39  ;;  %v1450_v3 = vld [vmem:[#allocation2 + $0xa0] ss:$8 sps:$4 sm:$0xff]   ;;  %v1454_v4 = vld [vmem:[#allocation2 + $0xb4] ss:$8 sps:$4 sm:$0xff]   ;;  %v1405_v5 = vld [vmem:[#allocation2 + $0x204] ss:$8 sps:$4 sm:$0xff]  }
  0x27   :  { %v1403_v6 = vld [vmem:[#allocation2 + $0x200] ss:$8 sps:$4 sm:$0xff]   ;;  %v1456_v8 = vld [vmem:[#allocation2 + $0xb0] ss:$8 sps:$4 sm:$0xff]   ;;  %v1460_v9 = vld [vmem:[#allocation2 + $0xc4] ss:$8 sps:$4 sm:$0xff]  }
  0x28   :  { %v1411_v10 = vld [vmem:[#allocation2 + $0x214] ss:$8 sps:$4 sm:$0xff]   ;;  %v1409_v11 = vld [vmem:[#allocation2 + $0x210] ss:$8 sps:$4 sm:$0xff]   ;;  %v43_v12 = vld [vmem:[%s1742_s0 + $0x8] sm:$0x3f] }
  0x29   :  { %749 = vmatpush1.bf16.msra.mxu0 %v1362_v14  ;;  %706 = vmatpush1.bf16.msra.mxu1 %v1414_v43  ;;  %v1462_v14 = vld [vmem:[#allocation2 + $0xc0] ss:$8 sps:$4 sm:$0xff]   ;;  %v1649_v15 = vrot.slane %v43_v12, %v1628_v25  ;;  %v1466_v16 = vld [vmem:[#allocation2 + $0xd4] ss:$8 sps:$4 sm:$0xff]   ;;  %v1472_v24 = vld [vmem:[#allocation2 + $0xe4] ss:$8 sps:$4 sm:$0xff]   ;;  %v63_v36 = vcombine.high %v43_v12, %v43_v12 }
  0x2a   :  { %750 = vmatprep.subr.bf16.mxu0 %v1363_v17  ;;  %707 = vmatprep.subr.bf16.mxu1 %v1418_v44  ;;  %v1417_v17 = vld [vmem:[#allocation2 + $0x224] ss:$8 sps:$4 sm:$0xff]   ;;  %v1415_v20 = vld [vmem:[#allocation2 + $0x220] ss:$8 sps:$4 sm:$0xff]   ;;  %v1423_v21 = vld [vmem:[#allocation2 + $0x234] ss:$8 sps:$4 sm:$0xff]  }
  0x2b   :  { %v78_v18 = vcombine.high %v1649_v15, %v1649_v15  ;;  %v1474_v26 = vld [vmem:[#allocation2 + $0xe0] ss:$8 sps:$4 sm:$0xff]   ;;  %v1478_v28 = vld [vmem:[#allocation2 + $0xf4] ss:$8 sps:$4 sm:$0xff]   ;;  %v1429_v29 = vld [vmem:[#allocation2 + $0x244] ss:$8 sps:$4 sm:$0xff]   ;;  %v77_v41 = vrot.slane %v63_v36, %v1628_v25 }
  0x2c   :  { %v1480_v31 = vld [vmem:[#allocation2 + $0xf0] ss:$8 sps:$4 sm:$0xff]   ;;  %v1489_v33 = vld [vmem:[#allocation2 + $0x304] ss:$8 sps:$4 sm:$0xff]   ;;  %v1435_v34 = vld [vmem:[#allocation2 + $0x254] ss:$8 sps:$4 sm:$0xff]  }
  0x2d   :  { %751 = vmatpush1.bf16.msra.mxu0 %v1365_v22  ;;  %708 = vmatpush1.bf16.msra.mxu1 %v1420_v47  ;;  %v1468_v22 = vld [vmem:[#allocation2 + $0xd0] ss:$8 sps:$4 sm:$0xff]   ;;  %v1487_v37 = vld [vmem:[#allocation2 + $0x300] ss:$8 sps:$4 sm:$0xff]   ;;  %v1447_v43 = vld [vmem:[#allocation2 + $0x274] ss:$8 sps:$4 sm:$0xff]   ;;  %v92_v44 = vpack.c.bf16 %v77_v41, %v77_v41 }
  0x2e   :  { %752 = vmatprep.subr.bf16.mxu0 %v1366_v23  ;;  %709 = vmatprep.subr.bf16.mxu1 %v1424_v48  ;;  %v91_v23 = vpack.c.bf16 %v78_v18, %v78_v18  ;;  %v1433_v38 = vld [vmem:[#allocation2 + $0x250] ss:$8 sps:$4 sm:$0xff]   ;;  %v1494_v39 = vld [vmem:[%s1745_s3 + $0x40] sm:$0xff]   ;;  %v1496_v25 = vld [vmem:[%s1745_s3 + $0x48] sm:$0xff]   ;;  %vm1081_vm2 = vcmask 523264   ;;  %vm1136_vm4 = vcmask 156672  }
  0x2f   :  { %v1453_v47 = vld [vmem:[#allocation2 + $0x284] ss:$8 sps:$4 sm:$0xff]   ;;  %v1509_v12 = vld [vmem:[%s1745_s3 + $0x38] sm:$0xff]  }
  0x30   :  { %v1497_v48 = vld [vmem:[%s1745_s3 + $0x8] sm:$0xff]  }
  0x31   :  { %753 = vmatpush1.bf16.msra.mxu0 %v1368_v27  ;;  %710 = vmatpush1.bf16.msra.mxu1 %v1426_v51  ;;  %v1421_v27 = vld [vmem:[#allocation2 + $0x230] ss:$8 sps:$4 sm:$0xff]   ;;  %v1459_v51 = vld [vmem:[#allocation2 + $0x294] ss:$8 sps:$4 sm:$0xff]  }
  0x32   :  { %754 = vmatprep.subr.bf16.mxu0 %v1369_v32  ;;  %711 = vmatprep.subr.bf16.mxu1 %v1430_v52  ;;  %v1427_v32 = vld [vmem:[#allocation2 + $0x240] ss:$8 sps:$4 sm:$0xff]   ;;  %v1499_v52 = vld [vmem:[%s1745_s3 + $0x10] sm:$0xff]  }
  0x35   :  { %755 = vmatpush1.bf16.msra.mxu0 %v1371_v35  ;;  %712 = vmatpush1.bf16.msra.mxu1 %v1432_v55  ;;  %v86_v35 = vpack.c.bf16 %v1634_v30, %v1634_v30  ;;  %v1439_v30 = vld [vmem:[#allocation2 + $0x260] ss:$8 sps:$4 sm:$0xff]  }
  0x36   :  { %756 = vmatprep.subr.bf16.mxu0 %v1372_v40  ;;  %713 = vmatprep.subr.bf16.mxu1 %v1436_v56  ;;  %v1441_v40 = vld [vmem:[#allocation2 + $0x264] ss:$8 sps:$4 sm:$0xff]   ;;  %v1463_v55 = vld [vmem:[#allocation2 + $0x2a0] ss:$8 sps:$4 sm:$0xff]   ;;  %v1471_v56 = vld [vmem:[#allocation2 + $0x2b4] ss:$8 sps:$4 sm:$0xff]  }
  0x39   :  { %757 = vmatpush1.bf16.msra.mxu0 %v1374_v42  ;;  %714 = vmatpush1.bf16.msra.mxu1 %v1438_v59  ;;  %v1568_v42 = vmov 0   ;;  %v1475_v59 = vld [vmem:[#allocation2 + $0x2c0] ss:$8 sps:$4 sm:$0xff]  }
  0x3a   :  { %758 = vmatprep.subr.bf16.mxu0 %v1375_v45  ;;  %715 = vmatprep.subr.bf16.mxu1 %v1442_v60  ;;  %v1495_v45 = vld [vmem:[%s1745_s3] sm:$0xff]   ;;  %v1483_v60 = vld [vmem:[#allocation2 + $0x2d4] ss:$8 sps:$4 sm:$0xff]  }
  0x3d   :  { %759 = vmatpush1.bf16.msra.mxu0 %v1377_v46  ;;  %716 = vmatpush1.bf16.msra.mxu1 %v1444_v63  ;;  %v1445_v46 = vld [vmem:[#allocation2 + $0x270] ss:$8 sps:$4 sm:$0xff]   ;;  %v1484_v63 = vld [vmem:[#allocation2 + $0x2e0] ss:$8 sps:$4 sm:$0xff]  }
  0x3e   :  { %760 = vmatprep.subr.bf16.mxu0 %v1378_v49  ;;  %717 = vmatprep.subr.bf16.mxu1 %v1448_v0  ;;  %v1451_v49 = vld [vmem:[#allocation2 + $0x280] ss:$8 sps:$4 sm:$0xff]   ;;  %v1492_v0 = vld [vmem:[#allocation2 + $0x2f4] ss:$8 sps:$4 sm:$0xff]  }
  0x41   :  { %761 = vmatpush1.bf16.msra.mxu0 %v1380_v50  ;;  %718 = vmatpush1.bf16.msra.mxu1 %v1450_v3  ;;  %v1498_v50 = vld [vmem:[%s1745_s3 + $0x50] sm:$0xff]   ;;  %v1500_v3 = vld [vmem:[%s1745_s3 + $0x58] sm:$0xff]  }
  0x42   :  { %762 = vmatprep.subr.bf16.mxu0 %v1381_v53  ;;  %719 = vmatprep.subr.bf16.mxu1 %v1454_v4  ;;  %v1457_v53 = vld [vmem:[#allocation2 + $0x290] ss:$8 sps:$4 sm:$0xff]  }
  0x43   :  { %v1501_v4 = vld [vmem:[%s1745_s3 + $0x18] sm:$0xff]  }
  0x45   :  { %763 = vmatpush1.bf16.msra.mxu0 %v1383_v54  ;;  %720 = vmatpush1.bf16.msra.mxu1 %v1456_v8  ;;  %v1465_v54 = vld [vmem:[#allocation2 + $0x2a4] ss:$8 sps:$4 sm:$0xff]  }
  0x46   :  { %764 = vmatprep.subr.bf16.mxu0 %v1384_v57  ;;  %721 = vmatprep.subr.bf16.mxu1 %v1460_v9  ;;  %v1469_v57 = vld [vmem:[#allocation2 + $0x2b0] ss:$8 sps:$4 sm:$0xff]   ;;  %v1505_v8 = vld [vmem:[%s1745_s3 + $0x28] sm:$0xff]  }
  0x47   :  { %v1506_v9 = vld [vmem:[%s1745_s3 + $0x70] sm:$0xff]  }
  0x49   :  { %765 = vmatpush1.bf16.msra.mxu0 %v1386_v58  ;;  %722 = vmatpush1.bf16.msra.mxu1 %v1462_v14  ;;  %v1477_v58 = vld [vmem:[#allocation2 + $0x2c4] ss:$8 sps:$4 sm:$0xff]   ;;  %v1569_v14 = vmov 0.0  }
  0x4a   :  { %766 = vmatprep.subr.bf16.mxu0 %v1390_v61  ;;  %723 = vmatprep.subr.bf16.mxu1 %v1466_v16  ;;  %v1481_v61 = vld [vmem:[#allocation2 + $0x2d0] ss:$8 sps:$4 sm:$0xff]  }
  0x4d   :  { %767 = vmatpush1.bf16.msra.mxu0 %v1392_v62  ;;  %724 = vmatpush1.bf16.msra.mxu1 %v1468_v22  ;;  %v1486_v62 = vld [vmem:[#allocation2 + $0x2e4] ss:$8 sps:$4 sm:$0xff]  }
  0x4e   :  { %768 = vmatprep.subr.bf16.mxu0 %v1396_v1  ;;  %725 = vmatprep.subr.bf16.mxu1 %v1472_v24  ;;  %v1490_v1 = vld [vmem:[#allocation2 + $0x2f0] ss:$8 sps:$4 sm:$0xff]   ;;  %v195_v24 = vsub.s32 0, %v1625_v19 }
  0x51   :  { %769 = vmatpush1.bf16.msra.mxu0 %v1398_v2  ;;  %726 = vmatpush1.bf16.msra.mxu1 %v1474_v26  ;;  %v90_v2 = vpack.c.bf16 %v1649_v15, %v1649_v15  ;;  %v191_v26 = vld [vmem:[%s1744_s2] sm:$0x3] }
  0x52   :  { %779 = vmatprep.subr.bf16.mxu0 %v1405_v5  ;;  %727 = vmatprep.subr.bf16.mxu1 %v1478_v28  ;;  %v1502_v5 = vld [vmem:[%s1745_s3 + $0x60] sm:$0xff]   ;;  %v196_v28 = vrot.slane %v191_v26, %v195_v24 }
  0x54   :  { %771 = vmatmul.mubr.bf16.vlgmr.msra.gmra.mrb[0].mxu0 %v88_v7  ;;  %v1504_v7 = vld [vmem:[%s1745_s3 + $0x68] sm:$0xff]  }
  0x55   :  { %780 = vmatpush1.bf16.msra.mxu0 %v1403_v6  ;;  %811 = vmatprep.mubr.bf16.mxu0 %v91_v23  ;;  %v1503_v6 = vld [vmem:[%s1745_s3 + $0x20] sm:$0xff]  }
  0x56   :  { %781 = vmatprep.subr.bf16.mxu0 %v1411_v10  ;;  %728 = vmatpush1.bf16.msra.mxu1 %v1480_v31  ;;  %v1507_v10 = vld [vmem:[%s1745_s3 + $0x30] sm:$0xff]  }
  0x57   :  { %820 = vmatprep.subr.bf16.mxu1 %v1489_v33 }
  0x59   :  { %782 = vmatpush1.bf16.msra.mxu0 %v1409_v11  ;;  %730 = vmatmul.mubr.bf16.vlgmr.msra.gmra.mrb[0].mxu1 %v86_v35  ;;  %v1508_v11 = vld [vmem:[%s1745_s3 + $0x78] sm:$0xff]  }
  0x5a   :  { %783 = vmatprep.subr.bf16.mxu0 %v1417_v17  ;;  %821 = vmatpush1.bf16.msra.mxu1 %v1487_v37 }
  0x5b   :  { %852 = vmatprep.mubr.bf16.mxu1 %v1568_v42  ;;  %1286 = vmatprep.subr.bf16.mxu1 %v1494_v39 }
  0x5d   :  { %784 = vmatpush1.bf16.msra.mxu0 %v1415_v20 }
  0x5e   :  { %785 = vmatprep.subr.bf16.mxu0 %v1423_v21 }
  0x61   :  { %786 = vmatpush1.bf16.msra.mxu0 %v1421_v27  ;;  %1262 = vmatmul.mubr.msk.bf16.vlgmr.msra.gmra.mrb[4].mxu1 %vm693_vm0, %v92_v44  ;;  %v199_v27 = vsub.s32 1, %v1625_v19  ;;  %v1511_v44 = vld [vmem:[%s1747_s5 + $0x8] sm:$0xff]  }
  0x62   :  { %787 = vmatprep.subr.bf16.mxu0 %v1429_v29  ;;  %1287 = vmatpush3.bf16.msra.mxu1 %v1495_v45  ;;  %v1512_v45 = vld [vmem:[%s1747_s5 + $0x10] sm:$0xff]  }
  0x63   :  { %1288 = vmatprep.subr.bf16.mxu1 %v1496_v25  ;;  %v200_v29 = vrot.slane %v191_v26, %v199_v27 }
  0x65   :  { %788 = vmatpush1.bf16.msra.mxu0 %v1427_v32 }
  0x66   :  { %789 = vmatprep.subr.bf16.mxu0 %v1435_v34  ;;  %1289 = vmatpush3.bf16.msra.mxu1 %v1497_v48 }
  0x67   :  { %1290 = vmatprep.subr.bf16.mxu1 %v1498_v50 }
  0x69   :  { %790 = vmatpush1.bf16.msra.mxu0 %v1433_v38 }
  0x6a   :  { %791 = vmatprep.subr.bf16.mxu0 %v1441_v40  ;;  %1291 = vmatpush3.bf16.msra.mxu1 %v1499_v52 }
  0x6b   :  { %1292 = vmatprep.subr.bf16.mxu1 %v1500_v3 }
  0x6d   :  { %792 = vmatpush1.bf16.msra.mxu0 %v1439_v30 }
  0x6e   :  { %793 = vmatprep.subr.bf16.mxu0 %v1447_v43  ;;  %1293 = vmatpush3.bf16.msra.mxu1 %v1501_v4  ;;  %v1510_v43 = vld [vmem:[%s1747_s5] sm:$0xff]  }
  0x6f   :  { %1294 = vmatprep.subr.bf16.mxu1 %v1502_v5 }
  0x71   :  { %794 = vmatpush1.bf16.msra.mxu0 %v1445_v46  ;;  %v1513_v46 = vld [vmem:[%s1747_s5 + $0x18] sm:$0xff]  }
  0x72   :  { %795 = vmatprep.subr.bf16.mxu0 %v1453_v47  ;;  %1295 = vmatpush3.bf16.msra.mxu1 %v1503_v6  ;;  %v1263_v47 = vld [vmem:[%s1746_s4] ss:$0 sm:$0xff]  ;;  %s1571_s4 = smov [#allocation5]  }
  0x73   :  { %1296 = vmatprep.subr.bf16.mxu1 %v1504_v7  ;;  %s1155_s5 = sshll.u32 %s1571_s4, 4  ;;  %s1156_s5 = int_to_ptr.vmem [resolvable:$true] %s1155_s5 }
  0x74   :  { %s1538_s13 = scalar_lea.vmem %s1156_s5, 128  ;;  %p1543_p9 = scmp.lt.s32.totalorder %s1156_s5, %s1156_s5 }
  0x75   :  { %796 = vmatpush1.bf16.msra.mxu0 %v1451_v49  ;;  %p1539_p8 = scmp.ne.s32.totalorder %s1156_s5, %s1538_s13  ;;  %p1544_p10 = scmp.lt.s32.totalorder %s1538_s13, %s1538_s13 }
  0x76   :  { %797 = vmatprep.subr.bf16.mxu0 %v1459_v51  ;;  %1297 = vmatpush3.bf16.msra.mxu1 %v1505_v8 }
  0x77   :  { %1298 = vmatprep.subr.bf16.mxu1 %v1506_v9  ;;  %p1545_p11 = por %p1544_p10, %p1543_p9 }
  0x79   :  { %798 = vmatpush1.bf16.msra.mxu0 %v1457_v53  ;;  %p1546_p12 = pnand %p1545_p11, %p1539_p8 }
  0x7a   :  { %799 = vmatprep.subr.bf16.mxu0 %v1465_v54  ;;  %1299 = vmatpush3.bf16.msra.mxu1 %v1507_v10 }
  0x7b   :  { %1300 = vmatprep.subr.bf16.mxu1 %v1508_v11 }
  0x7d   :  { %800 = vmatpush1.bf16.msra.mxu0 %v1463_v55  ;;  %v1280_v55 = vld [vmem:[%s1748_s6] ss:$0 sm:$0xff] }
  0x7e   :  { %801 = vmatprep.subr.bf16.mxu0 %v1471_v56  ;;  %1301 = vmatpush3.bf16.msra.mxu1 %v1509_v12 }
  0x7f   :  { %1313 = vmatprep.subr.bf16.mxu1 %v1569_v14 }
  0x81   :  { %802 = vmatpush1.bf16.msra.mxu0 %v1469_v57 }
  0x82   :  { %803 = vmatprep.subr.bf16.mxu0 %v1477_v58 }
  0x85   :  { %804 = vmatpush1.bf16.msra.mxu0 %v1475_v59 }
  0x86   :  { %805 = vmatprep.subr.bf16.mxu0 %v1483_v60 }
  0x89   :  { %806 = vmatpush1.bf16.msra.mxu0 %v1481_v61 }
  0x8a   :  { %807 = vmatprep.subr.bf16.mxu0 %v1486_v62 }
  0x8d   :  { %808 = vmatpush1.bf16.msra.mxu0 %v1484_v63 }
  0x8e   :  { %809 = vmatprep.subr.bf16.mxu0 %v1492_v0  ;;  %v1128_v0 = vand.u32 127, %v50_v13 }
  0x90   :  { %vm1129_vm3 = vcmp.ge.s32.totalorder %v1128_v0, 10 }
  0x91   :  { %810 = vmatpush1.bf16.msra.mxu0 %v1490_v1 }
  0x94   :  { %812 = vmatmul.mubr.bf16.vlgmr.msra.gmra.mrb[0].mxu0 %v90_v2 }
 0x12c   :  { %v731_v15 = vpop.f32.mrb[0].mxu1 }
 0x12d   :  { %v733_v16 = vpop.f32.mrb[1].mxu1  ;;  %v732_v31 = vadd.f32 %v731_v15, %v196_v28 }
 0x12e   :  { %v735_v17 = vpop.f32.mrb[2].mxu1  ;;  %v734_v32 = vadd.f32 %v733_v16, %v200_v29 }
 0x12f   :  { %v736_v18 = vpop.f32.mrb[3].mxu1 }
 0x134   :  { %v854_v20 = vpop.f32.mrb[4].mxu1 }
 0x135   :  { %v856_v21 = vpop.f32.mrb[5].mxu1 }
 0x136   :  { %v858_v22 = vpop.f32.mrb[6].mxu1 }
 0x137   :  { %v859_v23 = vpop.f32.mrb[7].mxu1 }
 0x167   :  { %v813_v33 = vpop.f32.mrb[0].mxu0 }
 0x168   :  { %v1326_v34 = vadd.f32 %v813_v33, %v732_v31  ;;  %v815_v35 = vpop.f32.mrb[1].mxu0 }
 0x169   :  { %v1329_v36 = vadd.f32 %v815_v35, %v734_v32  ;;  %v817_v37 = vpop.f32.mrb[2].mxu0 }
 0x16a   :  { %v1327_v38 = vadd.f32 %v1326_v34, %v854_v20  ;;  %v818_v39 = vpop.f32.mrb[3].mxu0 }
 0x16b   :  { %v1330_v40 = vadd.f32 %v1329_v36, %v856_v21 }
 0x16c   :  { %v861_v41 = vmax.f32 %v1327_v38, 0.0 }
 0x16d   :  { %v862_v42 = vmax.f32 %v1330_v40, 0.0 }
 0x16e   :  { %v863_v19 = vpack.c.bf16 %v861_v41, %v861_v41 }
 0x16f   :  { %v864_v30 = vpack.c.bf16 %v862_v42, %v862_v42 }
 0x171   :  { %1032 = vmatprep.mubr.bf16.mxu1 %v864_v30 }
 0x172   :  { %1033 = vmatmul.mubr.bf16.vlgmr.msra.gmra.mrb[8].mxu1 %v863_v19 }
 0x173   :  { %1314 = vmatpush3.bf16.msra.mxu1 %v1510_v43  ;;  %1321 = vmatprep.mubr.msk.bf16.mxu1 %vm1570_vm1, %v1569_v14 }
 0x174   :  { %1315 = vmatprep.subr.bf16.mxu1 %v1569_v14 }
 0x177   :  { %1316 = vmatpush3.bf16.msra.mxu1 %v1511_v44 }
 0x178   :  { %1317 = vmatprep.subr.bf16.mxu1 %v1569_v14 }
 0x17b   :  { %1318 = vmatpush3.bf16.msra.mxu1 %v1512_v45 }
 0x17c   :  { %1319 = vmatprep.subr.bf16.mxu1 %v1569_v14 }
 0x17f   :  { %1320 = vmatpush3.bf16.msra.mxu1 %v1513_v46 }
 0x245   :  { %v1302_v25 = vpop.f32.mrb[8].mxu1 }
 0x246   :  { %v1303_v48 = vpop.f32.mrb[9].mxu1 }
 0x247   :  { %v1304_v49 = vadd.f32 %v1303_v48, %v1302_v25  ;;  %v1305_v50 = vpop.f32.mrb[10].mxu1 }
 0x248   :  { %v1306_v51 = vpop.f32.mrb[11].mxu1 }
 0x249   :  { %v1035_v52 = vadd.f32 %v1304_v49, %v1263_v47 }
 0x24b   :  { %v1040_v53 = vmax.f32 %v1035_v52, 0.0 }
 0x24d   :  { %v1041_v54 = vpack.c.bf16 %v1040_v53, %v1040_v53 }
 0x24f   :  { %1322 = vmatmul.mubr.msk.bf16.vlgmr.msra.gmra.mrb[12].mxu1 %vm1081_vm2, %v1041_v54 }
 0x322   :  { %v1119_v56 = vpop.f32.mrb[12].mxu1 }
 0x323   :  { %v1120_v57 = vadd.f32 %v1280_v55, %v1119_v56  ;;  %v1323_v58 = vpop.f32.mrb[13].mxu1 }
 0x324   :  { %v1122_v59 = vpop.f32.mrb[14].mxu1 }
 0x325   :  { %v1125_v60 = vmax.f32 %v1120_v57, 0.0  ;;  %v1324_v61 = vpop.f32.mrb[15].mxu1 }
 0x327   :  { %v1126_v62 = vmul.f32 %v1125_v60, %v1125_v60 }
 0x329   :  { %v1130_v63 = vadd.f32 1e-08, %v1126_v62 }
 0x32b   :  { %1514 = vlog2.f32 %v1130_v63 }
 0x335   :  { %v1515_v1 = vpop.eup %1514 }
 0x336   :  { %v1132_v2 = vmul.f32 0.6931472, %v1515_v1 }
 0x338   :  { %v1133_v3 = vadd.f32 1.0, %v1132_v2 }
 0x33a   :  { %v1134_v4 = vsel %vm1129_vm3, %v1133_v3, 0.0 }
 0x33b   :  { %v1135_v5 = vsub.f32 %v1126_v62, %v1134_v4 }
 0x33d   :  { %v1137_v6 = vsel %vm1136_vm4, %v1135_v5, 0.0 }
 0x33e   :  { %1138 = vadd.xlane.f32.xlu0 %v1137_v6 }
 0x3cb   :  { %v1139_v7 = vpop.xlane.xlu0 %1138 }
 0x3cc   :  { %v1140_v8 = vrot.slane %v1139_v7, 4 }
 0x3ce   :  { %v1141_v9 = vadd.f32 %v1140_v8, %v1139_v7 }
 0x3d0   :  { %v1142_v10 = vrot.slane %v1141_v9, 2 }
 0x3d2   :  { %v1143_v11 = vadd.f32 %v1142_v10, %v1141_v9 }
 0x3d4   :  { %v1144_v12 = vrot.slane %v1143_v11, 1 }
 0x3d6   :  { %v1145_v14 = vadd.f32 %v1144_v12, %v1143_v11 }
 0x3d8   :  { %1335 = vpush %v1145_v14 }
 0x409   :  { %s1336_s6 = spop %1335 }
 0x40a   :  { %v1147_v13 = vstv %s1336_s6 }
 0x40b   :  { %1148 = vst [vmem:[#allocation5] sm:$0xff] %v1147_v13 }
 0x40c   :  { %1549 = shalt.err (!%p1546_p12)
}
 0x40d   :  { %s1550_s15 = scalar_lea.hbm %s1749_s7, 128 }
 0x40e   :  { %p1551_p13 = scmp.ne.s32.totalorder %s1749_s7, %s1550_s15  ;;  %p1554_p0 = scmp.lt.u32.totalorder %s1550_s15, %s1749_s7 }
 0x410   :  { %p1556_p1 = pnand %p1554_p0, %p1551_p13 }
 0x412   :  { %1559 = shalt.err (!%p1556_p1)
}
 0x413   :  { %1158 = dma.vmem_to_hbm [thread:$0]  %s1156_s5, 128, %s1749_s7, [#allocation4]  }
 0x414   :  { %1562 = dma.done.wait [#allocation4], 128  }
 0x415   :  { %1563 = vsyncadd [#allocation4], 4294967168 }
 0x416   :  { %1162 = vsyncpa [#allocation3], 1 }
 0x417   :  { %1163 = vsyncpa [#allocation4], 1 }

</bundles_post_ra>
